<compile_context>
chip_gen: v5e
topology: v5e:2x2
jax: 0.10.0
libtpu: 0.0.40
codegen_flags: <defaults>
</compile_context>

<pallas_src>
import functools

import jax
import jax.numpy as jnp
from jax.experimental import pallas as pl
from jax.experimental.pallas import tpu as pltpu

_EPS = 1e-5          # BatchNorm1d default eps
_NEG_SLOPE = 0.01    # LeakyReLU default negative_slope


def _round_up(x, m):
    return ((x + m - 1) // m) * m


def _vmem_budget_bytes():
    """Per-generation VMEM budget (~75% of physical, 32..96 MiB)."""
    try:
        cap = int(pltpu.get_tpu_info().vmem_capacity_bytes)
    except Exception:
        cap = 64 * 1024 * 1024  # conservative (v7x-sized) if query unavailable
    return max(32 * 1024 * 1024, min((cap * 3) // 4, 96 * 1024 * 1024))


def _pick_batch_tile(B, D_in, D_out, H, budget, mxu_bytes):
    """Largest batch tile (multiple of 16) whose working set fits the budget."""
    cap = _round_up(max(B, 16), 16)
    resident_w = (2 * (D_in * H + H * D_out) * mxu_bytes   # W1, W2 (2 bufs each)
                  + 6 * H * 4 + 4 * D_out * 4)             # b1, gamma, beta, b2
    for tb in (2048, 1024, 512, 256, 128, 64, 32, 16):
        if tb > cap:
            continue
        b_pad = _round_up(B, tb)
        need = (2 * tb * D_in * 4        # double-buffered x tiles (f32 in HBM)
                + 2 * tb * D_out * 4     # double-buffered output tiles
                + b_pad * H * 4          # VMEM-resident h activation scratch
                + 4 * H * 4              # stats scratch
                + resident_w)
        if need <= int(budget * 0.8):    # headroom for compiler scratch
            return tb, b_pad
    return cap, cap                      # tiny batches: single tile


# --------------------------------------------------------------------------
# Fused kernel: phase 0 = Linear1 + batch stats, phase 1 = BN + LeakyReLU + Linear2
# --------------------------------------------------------------------------
def _fused_kernel(x_ref, w1_ref, b1_ref, gamma_ref, beta_ref, w2_ref, b2_ref,
                  o_ref, h_scr, stats_scr, *, B, TB, mxu_dtype):
    p = pl.program_id(0)          # phase axis: 0 = stats, 1 = apply
    i = pl.program_id(1)          # batch-tile axis
    row0 = pl.multiple_of(i * TB, 16)
    H = h_scr.shape[1]

    @pl.when((p == 0) & (i == 0))
    def _init():
        stats_scr[...] = jnp.zeros_like(stats_scr)

    @pl.when(p == 0)
    def _stats_phase():
        # Linear 1 on the MXU; operands cast in-kernel, f32 accumulation.
        z = jnp.dot(x_ref[...].astype(mxu_dtype), w1_ref[...],
                    preferred_element_type=jnp.float32)
        # Keep the full activation resident in VMEM (no HBM round trip).
        h_scr[pl.ds(row0, TB), :] = z + b1_ref[...]
        # One merged M=1 stats matmul: [sum(z), sum(z*z)] in a single MXU pass.
        # Stats on the pre-bias z: better conditioning and zero-padded rows
        # contribute exactly 0, so no masking is needed for ragged batches.
        ones = jnp.ones((1, TB), dtype=jnp.float32)
        zz = jnp.concatenate([z, z * z], axis=-1)            # (TB, 2H)
        stats_scr[...] += jnp.dot(ones, zz, preferred_element_type=jnp.float32)

    @pl.when(p == 1)
    def _apply_phase():
        stats = stats_scr[...]                                # (1, 2H) f32
        inv_b = jnp.float32(1.0 / B)
        mean_z = stats[:, :H] * inv_b
        var = stats[:, H:] * inv_b - mean_z * mean_z          # biased variance
        inv_std = jax.lax.rsqrt(var + jnp.float32(_EPS))
        scale = gamma_ref[...] * inv_std
        shift = beta_ref[...] - (mean_z + b1_ref[...]) * scale

        h = h_scr[pl.ds(row0, TB), :]
        a = h * scale + shift                                 # folded BN affine
        a = jnp.where(a > 0, a, jnp.float32(_NEG_SLOPE) * a)  # LeakyReLU
        out = jnp.dot(a.astype(mxu_dtype), w2_ref[...],
                      preferred_element_type=jnp.float32)
        o_ref[...] = (out + b2_ref[...]).astype(o_ref.dtype)


def logistic_regression_forward(x, w1, b1, gamma, beta, w2, b2, *,
                                mxu_dtype=jnp.bfloat16, batch_tile=None):
    """x: (B, D_in).  Returns (B, D_out) f32.

    Weights are stored as (D_in, D_out) so the kernel computes x @ W + b,
    identical math to PyTorch's x @ W.T + b.  BatchNorm1d is evaluated in
    training mode (batch mean, biased batch variance) over the FULL batch.
    """
    B, D_in = x.shape
    H = w1.shape[1]
    D_out = w2.shape[1]

    budget = _vmem_budget_bytes()
    mxu_bytes = jnp.dtype(mxu_dtype).itemsize
    if batch_tile is None:
        TB, B_pad = _pick_batch_tile(B, D_in, D_out, H, budget, mxu_bytes)
    else:
        TB = max(16, _round_up(int(batch_tile), 16))
        B_pad = _round_up(B, TB)
    n_tiles = B_pad // TB

    if B_pad * H * 4 > budget // 2:
        # TODO(synk): add a two-pass (HBM round-trip) fallback for huge batches.
        raise ValueError(
            f"batch {B} needs {B_pad * H * 4} B of VMEM-resident activations; "
            f"exceeds the {budget} B budget")

    # Zero-pad the batch to a multiple of TB; pad rows add exactly 0 to the
    # pre-bias statistics and their outputs are sliced off below.
    if B_pad != B:
        x = jnp.pad(x, ((0, B_pad - B), (0, 0)))

    # Tiny one-time weight casts (biases / BN params stay f32); x is cast
    # in-kernel so no extra XLA pass over the activations.
    w1_c = w1.astype(mxu_dtype)
    w2_c = w2.astype(mxu_dtype)

    kernel = functools.partial(_fused_kernel, B=B, TB=TB, mxu_dtype=mxu_dtype)

    # x is streamed during phase 0 only; during phase 1 its index_map parks on
    # the last block so no redundant DMA is issued.
    x_map = lambda p, i: (i * (1 - p) + (n_tiles - 1) * p, 0)
    # Output blocks stay parked on block 0 through phase 0 (never written back)
    # and advance with the tile index during phase 1.
    o_map = lambda p, i: (i * p, 0)
    const = lambda p, i: (0, 0)

    out = pl.pallas_call(
        kernel,
        out_shape=jax.ShapeDtypeStruct((B_pad, D_out), jnp.float32),
        grid=(2, n_tiles),
        in_specs=[
            pl.BlockSpec((TB, D_in), x_map),
            pl.BlockSpec((D_in, H), const),     # W1 (resident)
            pl.BlockSpec((1, H), const),        # b1
            pl.BlockSpec((1, H), const),        # gamma
            pl.BlockSpec((1, H), const),        # beta
            pl.BlockSpec((H, D_out), const),    # W2 (resident)
            pl.BlockSpec((1, D_out), const),    # b2
        ],
        out_specs=pl.BlockSpec((TB, D_out), o_map),
        scratch_shapes=[
            pltpu.VMEM((B_pad, H), jnp.float32),     # resident h activation
            pltpu.VMEM((1, 2 * H), jnp.float32),     # [sum(z), sum(z*z)]
        ],
        compiler_params=pltpu.CompilerParams(
            dimension_semantics=("arbitrary", "arbitrary"),
            vmem_limit_bytes=budget),
    )(x, w1_c, b1, gamma, beta, w2_c, b2)

    return out if B_pad == B else out[:B]


# --------------------------------------------------------------------------
# Params / reference / self-test
# --------------------------------------------------------------------------
def init_params(key, input_dim, output_dim, hidden=128):
    """Synthetic init matching the module: Xavier-normal Linear weights,
    PyTorch-style uniform biases, BN gamma=1 / beta=0."""
    k1, k2, k3, k4 = jax.random.split(key, 4)

    def xavier_normal(k, fan_in, fan_out):
        std = (2.0 / (fan_in + fan_out)) ** 0.5
        return std * jax.random.normal(k, (fan_in, fan_out), dtype=jnp.float32)

    w1 = xavier_normal(k1, input_dim, hidden)
    b1 = jax.random.uniform(k2, (1, hidden), dtype=jnp.float32,
                            minval=-1.0 / (input_dim ** 0.5),
                            maxval=1.0 / (input_dim ** 0.5))
    gamma = jnp.ones((1, hidden), dtype=jnp.float32)
    beta = jnp.zeros((1, hidden), dtype=jnp.float32)
    w2 = xavier_normal(k3, hidden, output_dim)
    b2 = jax.random.uniform(k4, (1, output_dim), dtype=jnp.float32,
                            minval=-1.0 / (hidden ** 0.5),
                            maxval=1.0 / (hidden ** 0.5))
    return w1, b1, gamma, beta, w2, b2


def _reference(x, w1, b1, gamma, beta, w2, b2):
    """Pure-JAX f32 reference mirroring the PyTorch module (training-mode BN)."""
    h = x @ w1 + b1
    mean = jnp.mean(h, axis=0, keepdims=True)
    var = jnp.mean((h - mean) ** 2, axis=0, keepdims=True)   # biased
    h = (h - mean) / jnp.sqrt(var + _EPS) * gamma + beta
    h = jnp.where(h > 0, h, _NEG_SLOPE * h)
    return h @ w2 + b2


if __name__ == "__main__":
    key = jax.random.PRNGKey(0)
    kx, kp = jax.random.split(key)

    B, input_dim, output_dim = 256, 64, 10
    x = jax.random.normal(kx, (B, input_dim), dtype=jnp.float32)
    params = init_params(kp, input_dim, output_dim)
    ref = _reference(x, *params)

    # Multi-tile batch grid (4 x 64-row tiles), exact f32 MXU path.
    out = jax.block_until_ready(
        logistic_regression_forward(x, *params, mxu_dtype=jnp.float32,
                                    batch_tile=64))
    assert out.shape == (B, output_dim), out.shape
    assert jnp.allclose(out, ref, atol=1e-4, rtol=1e-4), (
        float(jnp.max(jnp.abs(out - ref))))

    # Batch-padding path (B=256 padded to 288 with TB=96); stats remain exact.
    out_pad = jax.block_until_ready(
        logistic_regression_forward(x, *params, mxu_dtype=jnp.float32,
                                    batch_tile=96))
    assert out_pad.shape == (B, output_dim), out_pad.shape
    assert jnp.allclose(out_pad, ref, atol=1e-4, rtol=1e-4), (
        float(jnp.max(jnp.abs(out_pad - ref))))

    # Default path: auto tile + bf16 MXU operands (recommended on v5e/v6e/v7x);
    # elementwise / BN math stays f32, only matmul rounding differs.
    out_bf16 = jax.block_until_ready(logistic_regression_forward(x, *params))
    assert out_bf16.shape == (B, output_dim), out_bf16.shape
    assert jnp.allclose(out_bf16, ref, atol=5e-2, rtol=5e-2), (
        float(jnp.max(jnp.abs(out_bf16 - ref))))

    # Ragged batch (not a multiple of 16): zero-pad + exact pre-bias stats.
    B2 = 250
    x2 = x[:B2]
    ref2 = _reference(x2, *params)
    out2 = jax.block_until_ready(
        logistic_regression_forward(x2, *params, mxu_dtype=jnp.float32))
    assert out2.shape == (B2, output_dim), out2.shape
    assert jnp.allclose(out2, ref2, atol=1e-4, rtol=1e-4), (
        float(jnp.max(jnp.abs(out2 - ref2))))

    print("KERNEL_OK")
</pallas_src>

<mosaic_0001>
module attributes {stable_mosaic.version = 11 : i64} {
  func.func @_fused_kernel(%arg0: i32, %arg1: i32, %arg2: memref<64x64xf32, #tpu.memory_space<vmem>>, %arg3: memref<64x128xf32, #tpu.memory_space<vmem>>, %arg4: memref<1x128xf32, #tpu.memory_space<vmem>>, %arg5: memref<1x128xf32, #tpu.memory_space<vmem>>, %arg6: memref<1x128xf32, #tpu.memory_space<vmem>>, %arg7: memref<128x10xf32, #tpu.memory_space<vmem>>, %arg8: memref<1x10xf32, #tpu.memory_space<vmem>>, %arg9: memref<64x10xf32, #tpu.memory_space<vmem>>, %arg10: memref<256x128xf32, #tpu.memory_space<vmem>>, %arg11: memref<1x256xf32, #tpu.memory_space<vmem>>) attributes {dimension_semantics = [#tpu.dimension_semantics<arbitrary>, #tpu.dimension_semantics<arbitrary>], iteration_bounds = array<i64: 2, 4>, scalar_prefetch = 0 : i64, scratch_operands = 2 : i64, tpu.core_type = #tpu.core_type<tc>, window_params = [{transform_indices = @transform_0, window_bounds = array<i64: 64, 64>}, {pipeline_mode = #tpu.pipeline_mode<synchronous>, transform_indices = @transform_1, window_bounds = array<i64: 64, 128>}, {pipeline_mode = #tpu.pipeline_mode<synchronous>, transform_indices = @transform_2, window_bounds = array<i64: 1, 128>}, {pipeline_mode = #tpu.pipeline_mode<synchronous>, transform_indices = @transform_3, window_bounds = array<i64: 1, 128>}, {pipeline_mode = #tpu.pipeline_mode<synchronous>, transform_indices = @transform_4, window_bounds = array<i64: 1, 128>}, {pipeline_mode = #tpu.pipeline_mode<synchronous>, transform_indices = @transform_5, window_bounds = array<i64: 128, 10>}, {pipeline_mode = #tpu.pipeline_mode<synchronous>, transform_indices = @transform_6, window_bounds = array<i64: 1, 10>}, {transform_indices = @transform_7, window_bounds = array<i64: 64, 10>}]} {
    %c64_i32 = arith.constant 64 : i32
    %0 = arith.muli %arg1, %c64_i32 : i32
    %1 = tpu.assume_multiple %0, 16 : i32
    %c0_i32 = arith.constant 0 : i32
    %2 = arith.cmpi eq, %arg0, %c0_i32 : i32
    %c0_i32_0 = arith.constant 0 : i32
    %3 = arith.cmpi eq, %arg1, %c0_i32_0 : i32
    %4 = arith.andi %2, %3 : i1
    %5 = arith.extui %4 : i1 to i32
    %c0_i32_1 = arith.constant 0 : i32
    %6 = arith.cmpi ne, %5, %c0_i32_1 : i32
    scf.if %6 {
      %cst = arith.constant 0.000000e+00 : f32
      %13 = vector.broadcast %cst : f32 to vector<1x256xf32>
      %c0 = arith.constant 0 : index
      %c0_5 = arith.constant 0 : index
      %14 = vector.load %arg11[%c0, %c0_5] : memref<1x256xf32, #tpu.memory_space<vmem>>, vector<1x256xf32>
      tpu.vector_store %arg11[%c0, %c0_5], %13 {strides = array<i32>} : memref<1x256xf32, #tpu.memory_space<vmem>>, vector<1x256xf32>,
    } else {
    }
    %c0_i32_2 = arith.constant 0 : i32
    %7 = arith.cmpi eq, %arg0, %c0_i32_2 : i32
    %8 = arith.extui %7 : i1 to i32
    %c0_i32_3 = arith.constant 0 : i32
    %9 = arith.cmpi ne, %8, %c0_i32_3 : i32
    scf.if %9 {
      %c0 = arith.constant 0 : index
      %c0_5 = arith.constant 0 : index
      %13 = vector.load %arg2[%c0, %c0_5] : memref<64x64xf32, #tpu.memory_space<vmem>>, vector<64x64xf32>
      %c0_6 = arith.constant 0 : index
      %c0_7 = arith.constant 0 : index
      %14 = vector.load %arg3[%c0_6, %c0_7] : memref<64x128xf32, #tpu.memory_space<vmem>>, vector<64x128xf32>
      %cst = arith.constant dense<0.000000e+00> : vector<64x128xf32>
      %15 = tpu.matmul %13, %14, %cst {dimension_numbers = #tpu.dot_dimension_numbers<[1], [0], [0], [1], [0, 0, 1, 1], [], []>} : vector<64x64xf32>, vector<64x128xf32>, vector<64x128xf32> -> vector<64x128xf32>
      %c0_8 = arith.constant 0 : index
      %c0_9 = arith.constant 0 : index
      %16 = vector.load %arg4[%c0_8, %c0_9] : memref<1x128xf32, #tpu.memory_space<vmem>>, vector<1x128xf32>
      %17 = vector.broadcast %16 : vector<1x128xf32> to vector<64x128xf32>
      %18 = arith.addf %15, %17 : vector<64x128xf32>
      %19 = arith.index_cast %1 : i32 to index
      %c0_10 = arith.constant 0 : index
      %20 = vector.load %arg10[%19, %c0_10] : memref<256x128xf32, #tpu.memory_space<vmem>>, vector<64x128xf32>
      tpu.vector_store %arg10[%19, %c0_10], %18 {strides = array<i32>} : memref<256x128xf32, #tpu.memory_space<vmem>>, vector<64x128xf32>,
      %cst_11 = arith.constant 1.000000e+00 : f32
      %21 = vector.broadcast %cst_11 : f32 to vector<1x64xf32>
      %22 = arith.mulf %15, %15 : vector<64x128xf32>
      %23 = tpu.concatenate %15, %22 in 1 : vector<64x128xf32>, vector<64x128xf32> -> vector<64x256xf32>
      %c0_12 = arith.constant 0 : index
      %c0_13 = arith.constant 0 : index
      %24 = vector.load %arg11[%c0_12, %c0_13] : memref<1x256xf32, #tpu.memory_space<vmem>>, vector<1x256xf32>
      %cst_14 = arith.constant dense<0.000000e+00> : vector<1x256xf32>
      %25 = tpu.matmul %21, %23, %cst_14 {dimension_numbers = #tpu.dot_dimension_numbers<[1], [0], [0], [1], [0, 0, 1, 1], [], []>} : vector<1x64xf32>, vector<64x256xf32>, vector<1x256xf32> -> vector<1x256xf32>
      %26 = arith.addf %24, %25 : vector<1x256xf32>
      %c0_15 = arith.constant 0 : index
      %c0_16 = arith.constant 0 : index
      %27 = vector.load %arg11[%c0_15, %c0_16] : memref<1x256xf32, #tpu.memory_space<vmem>>, vector<1x256xf32>
      tpu.vector_store %arg11[%c0_15, %c0_16], %26 {strides = array<i32>} : memref<1x256xf32, #tpu.memory_space<vmem>>, vector<1x256xf32>,
    } else {
    }
    %c1_i32 = arith.constant 1 : i32
    %10 = arith.cmpi eq, %arg0, %c1_i32 : i32
    %11 = arith.extui %10 : i1 to i32
    %c0_i32_4 = arith.constant 0 : i32
    %12 = arith.cmpi ne, %11, %c0_i32_4 : i32
    scf.if %12 {
      %c0 = arith.constant 0 : index
      %c0_5 = arith.constant 0 : index
      %13 = vector.load %arg11[%c0, %c0_5] : memref<1x256xf32, #tpu.memory_space<vmem>>, vector<1x256xf32>
      %14 = vector.extract_strided_slice %13 {offsets = [0, 0], sizes = [1, 128], strides = [1, 1]} : vector<1x256xf32> to vector<1x128xf32>
      %cst = arith.constant 3.906250e-03 : f32
      %15 = vector.broadcast %cst : f32 to vector<1x128xf32>
      %16 = arith.mulf %14, %15 : vector<1x128xf32>
      %17 = vector.extract_strided_slice %13 {offsets = [0, 128], sizes = [1, 128], strides = [1, 1]} : vector<1x256xf32> to vector<1x128xf32>
      %cst_6 = arith.constant 3.906250e-03 : f32
      %18 = vector.broadcast %cst_6 : f32 to vector<1x128xf32>
      %19 = arith.mulf %17, %18 : vector<1x128xf32>
      %20 = arith.mulf %16, %16 : vector<1x128xf32>
      %21 = arith.subf %19, %20 : vector<1x128xf32>
      %cst_7 = arith.constant 9.99999974E-6 : f32
      %22 = vector.broadcast %cst_7 : f32 to vector<1x128xf32>
      %23 = arith.addf %21, %22 : vector<1x128xf32>
      %24 = math.rsqrt %23 : vector<1x128xf32>
      %c0_8 = arith.constant 0 : index
      %c0_9 = arith.constant 0 : index
      %25 = vector.load %arg5[%c0_8, %c0_9] : memref<1x128xf32, #tpu.memory_space<vmem>>, vector<1x128xf32>
      %26 = arith.mulf %25, %24 : vector<1x128xf32>
      %c0_10 = arith.constant 0 : index
      %c0_11 = arith.constant 0 : index
      %27 = vector.load %arg6[%c0_10, %c0_11] : memref<1x128xf32, #tpu.memory_space<vmem>>, vector<1x128xf32>
      %c0_12 = arith.constant 0 : index
      %c0_13 = arith.constant 0 : index
      %28 = vector.load %arg4[%c0_12, %c0_13] : memref<1x128xf32, #tpu.memory_space<vmem>>, vector<1x128xf32>
      %29 = arith.addf %16, %28 : vector<1x128xf32>
      %30 = arith.mulf %29, %26 : vector<1x128xf32>
      %31 = arith.subf %27, %30 : vector<1x128xf32>
      %32 = arith.index_cast %1 : i32 to index
      %c0_14 = arith.constant 0 : index
      %33 = vector.load %arg10[%32, %c0_14] : memref<256x128xf32, #tpu.memory_space<vmem>>, vector<64x128xf32>
      %34 = vector.broadcast %26 : vector<1x128xf32> to vector<64x128xf32>
      %35 = arith.mulf %33, %34 : vector<64x128xf32>
      %36 = vector.broadcast %31 : vector<1x128xf32> to vector<64x128xf32>
      %37 = arith.addf %35, %36 : vector<64x128xf32>
      %cst_15 = arith.constant 0.000000e+00 : f32
      %38 = vector.broadcast %cst_15 : f32 to vector<64x128xf32>
      %39 = arith.cmpf ogt, %37, %38 : vector<64x128xf32>
      %cst_16 = arith.constant 0.00999999977 : f32
      %40 = vector.broadcast %cst_16 : f32 to vector<64x128xf32>
      %41 = arith.mulf %40, %37 : vector<64x128xf32>
      %42 = arith.select %39, %37, %41 : vector<64x128xi1>, vector<64x128xf32>
      %c0_17 = arith.constant 0 : index
      %c0_18 = arith.constant 0 : index
      %43 = vector.load %arg7[%c0_17, %c0_18] : memref<128x10xf32, #tpu.memory_space<vmem>>, vector<128x10xf32>
      %cst_19 = arith.constant dense<0.000000e+00> : vector<64x10xf32>
      %44 = tpu.matmul %42, %43, %cst_19 {dimension_numbers = #tpu.dot_dimension_numbers<[1], [0], [0], [1], [0, 0, 1, 1], [], []>} : vector<64x128xf32>, vector<128x10xf32>, vector<64x10xf32> -> vector<64x10xf32>
      %c0_20 = arith.constant 0 : index
      %c0_21 = arith.constant 0 : index
      %45 = vector.load %arg8[%c0_20, %c0_21] : memref<1x10xf32, #tpu.memory_space<vmem>>, vector<1x10xf32>
      %46 = vector.broadcast %45 : vector<1x10xf32> to vector<64x10xf32>
      %47 = arith.addf %44, %46 : vector<64x10xf32>
      %c0_22 = arith.constant 0 : index
      %c0_23 = arith.constant 0 : index
      %48 = vector.load %arg9[%c0_22, %c0_23] : memref<64x10xf32, #tpu.memory_space<vmem>>, vector<64x10xf32>
      tpu.vector_store %arg9[%c0_22, %c0_23], %47 {strides = array<i32>} : memref<64x10xf32, #tpu.memory_space<vmem>>, vector<64x10xf32>,
    } else {
    }
    return
  }
  func.func @transform_0(%arg0: i32, %arg1: i32) -> (i32, i32) {
    %c1_i32 = arith.constant 1 : i32
    %0 = arith.subi %c1_i32, %arg0 : i32
    %1 = arith.muli %arg1, %0 : i32
    %c3_i32 = arith.constant 3 : i32
    %2 = arith.muli %c3_i32, %arg0 : i32
    %3 = arith.addi %1, %2 : i32
    %c0_i32 = arith.constant 0 : i32
    %c0_i32_0 = arith.constant 0 : i32
    return %3, %c0_i32 : i32, i32
  }
  func.func @transform_1(%arg0: i32, %arg1: i32) -> (i32, i32) {
    %c0_i32 = arith.constant 0 : i32
    %c0_i32_0 = arith.constant 0 : i32
    %c0_i32_1 = arith.constant 0 : i32
    return %c0_i32, %c0_i32_0 : i32, i32
  }
  func.func @transform_2(%arg0: i32, %arg1: i32) -> (i32, i32) {
    %c0_i32 = arith.constant 0 : i32
    %c0_i32_0 = arith.constant 0 : i32
    %c0_i32_1 = arith.constant 0 : i32
    return %c0_i32, %c0_i32_0 : i32, i32
  }
  func.func @transform_3(%arg0: i32, %arg1: i32) -> (i32, i32) {
    %c0_i32 = arith.constant 0 : i32
    %c0_i32_0 = arith.constant 0 : i32
    %c0_i32_1 = arith.constant 0 : i32
    return %c0_i32, %c0_i32_0 : i32, i32
  }
  func.func @transform_4(%arg0: i32, %arg1: i32) -> (i32, i32) {
    %c0_i32 = arith.constant 0 : i32
    %c0_i32_0 = arith.constant 0 : i32
    %c0_i32_1 = arith.constant 0 : i32
    return %c0_i32, %c0_i32_0 : i32, i32
  }
  func.func @transform_5(%arg0: i32, %arg1: i32) -> (i32, i32) {
    %c0_i32 = arith.constant 0 : i32
    %c0_i32_0 = arith.constant 0 : i32
    %c0_i32_1 = arith.constant 0 : i32
    return %c0_i32, %c0_i32_0 : i32, i32
  }
  func.func @transform_6(%arg0: i32, %arg1: i32) -> (i32, i32) {
    %c0_i32 = arith.constant 0 : i32
    %c0_i32_0 = arith.constant 0 : i32
    %c0_i32_1 = arith.constant 0 : i32
    return %c0_i32, %c0_i32_0 : i32, i32
  }
  func.func @transform_7(%arg0: i32, %arg1: i32) -> (i32, i32) {
    %0 = arith.muli %arg1, %arg0 : i32
    %c0_i32 = arith.constant 0 : i32
    %c0_i32_0 = arith.constant 0 : i32
    return %0, %c0_i32 : i32, i32
  }
}

</mosaic_0001>

<bundles_post_ra>
// kernel: tpu_custom_call.1
= control target key start
LH: loop header
LB: loop body
LE: loop exit
PB: predicated region body
PF: predicated region fallthrough
CT: control target
= control target key end

     0   :  { %s955_s24 = smov 0   ;;  %s957_s25 = smov 0   ;;  %s1154_s0 = inlined_call_operand.vmem [shape: f32[256,64], index: 0, kind: input, shape index: {}]   ;;  %s1155_s1 = inlined_call_operand.vmem [shape: f32[64,128], index: 1, kind: input, shape index: {}]   ;;  %s1156_s2 = inlined_call_operand.vmem [shape: f32[1,128], index: 2, kind: input, shape index: {}]   ;;  %s1157_s3 = inlined_call_operand.vmem [shape: f32[1,128], index: 3, kind: input, shape index: {}]   ;;  %s1158_s4 = inlined_call_operand.vmem [shape: f32[1,128], index: 4, kind: input, shape index: {}]   ;;  %s1159_s5 = inlined_call_operand.vmem [shape: f32[128,10], index: 5, kind: input, shape index: {}]   ;;  %s1160_s6 = inlined_call_operand.vmem [shape: f32[1,10], index: 6, kind: input, shape index: {}]   ;;  %s1161_s7 = inlined_call_operand.vmem [shape: f32[256,10], index: 7, kind: output, shape index: {}]  }
   0x1   :  { %s959_s26 = smov 0   ;;  %s961_s27 = smov 0  }
   0x2   :  { %s963_s28 = smov 0  }
   0x3 LB: > { %s26_s29 = sadd.s32 1, %s903_s26  ;;  %s29_s30 = sadd.s32 1, %s907_s27  ;;  %s911_s28 = sphi %s963_s28, %s17_s28   ;;  %s907_s27 = sphi %s961_s27, %s1165_s27   ;;  %s903_s26 = sphi %s959_s26, %s1164_s26   ;;  %s899_s25 = sphi %s957_s25, %s1163_s25   ;;  %s895_s24 = sphi %s955_s24, %s1162_s24  }
   0x4   : > { %p27_p0 = scmp.ge.s32.totalorder %s26_s29, 4  ;;  %p743_p1 = scmp.ge.s32.totalorder %s911_s28, 1 }
   0x5   : > { %p268_p2 = scmp.lt.s32.totalorder %s911_s28, 9 }
   0x6   : > { %s1167_s29 = smov (%p27_p0, %s26_s29), 0  ;;  %s1169_s30 = smov (!%p27_p0, %s29_s30), %s907_s27 }
   0x7   : > { %p269_p3 = pnand %p743_p1, %p268_p2  ;;  %p31_p4 = scmp.ge.s32.totalorder %s1169_s30, 2 }
   0x8   : > { %s305_s8 = ssub.s32 (!%p269_p3), 1, %s899_s25  ;;  %s307_s9 = smul.u32 (!%p269_p3), 3, %s899_s25 }
   0x9   : > { %s1171_s30 = smov (%p31_p4, %s1169_s30), 0  ;;  %272 = sbr.rel (%p269_p3) target bundleno = 547 (0x223), region = 48 }
   0xa   : > { %s306_s10 = smul.u32 (!%p269_p3), %s895_s24, %s305_s8  ;;  %s748_s11 = sshll.u32 (!%p269_p3), %s895_s24, 6 }
   0xb   : > { %s319_s12 = smul.u32 (!%p269_p3), %s895_s24, %s899_s25  ;;  %p328_p5 = scmp.eq.s32.totalorder (!%p269_p3), %s899_s25, 0 }
   0xc   : > { %s308_s13 = sadd.s32 (!%p269_p3), %s307_s9, %s306_s10  ;;  %p329_p6 = scmp.eq.s32.totalorder (!%p269_p3), %s895_s24, 0 }
   0xd   : > { %s744_s14 = sshll.u32 (!%p269_p3), %s308_s13, 3  ;;  %s746_s15 = sshll.u32 (!%p269_p3), %s319_s12, 3 }
   0xe   : > { %p310_p7 = scmp.lt.s32.totalorder %s744_s14, 31  ;;  %p321_p8 = scmp.lt.s32.totalorder %s746_s15, 31 }
   0xf   : > { %p330_p9 = pnand %p329_p6, %p328_p5 }
  0x10   : > { %s1173_s14 = smov (!%p310_p7, %s744_s14), 31  ;;  %s1175_s15 = smov (!%p321_p8, %s746_s15), 31 }
  0x11   : > { %s745_s16 = sshll.u32 %s1173_s14, 3  ;;  %s747_s20 = sshll.u32 %s1175_s15, 3 }
  0x12   : > { %s1000_s19 = scalar_lea.vmem %s1154_s0, %s745_s16  ;;  %s1005_s23 = scalar_lea.vmem %s1161_s7, %s747_s20 }
  0x13   : > { %333 = sbr.rel (%p330_p9) target bundleno = 28 (0x1c), region = 52 }
  0x18   : > { %v334_v0 = vlaneseq  ;;  %v913_v1 = vmov 0.0  }
  0x1a   : > { %vm336_vm0 = vcmp.lt.s32.totalorder %v334_v0, 256 }
  0x1b   : > { %338 = vst.msk [vmem:[#allocation3] sm:$0x3] %vm336_vm0, %v913_v1 }
  0x1c PF: > { %p749_p10 = scmp.ne.s32.totalorder %s899_s25, 0 }
  0x1d   : > { %s436_s14 = scalar_lea.vmem (!%p749_p10), [#allocation2], %s748_s11 }
  0x1e   : > { %341 = sbr.rel (%p749_p10) target bundleno = 354 (0x162), region = 56 }
  0x23   : > { %v357_v2 = vld [vmem:[%s1155_s1 + $0x38] sm:$0xff]  ;;  %v356_v3 = vld [vmem:[%s1155_s1 + $0x30] sm:$0xff]  ;;  %v355_v4 = vld [vmem:[%s1155_s1 + $0x28] sm:$0xff]  ;;  %vm358_vm1 = vcmask 523264   ;;  %v914_v43 = vmov 1.0   ;;  %v504_v44 = vlaneseq  ;;  %vm500_vm2 = vcmask 1040384  }
  0x24   : > { %764 = vmatpush.msra.mxu3 %v357_v2  ;;  %391 = vmatpush.msra.mxu0 %v357_v2  ;;  %v354_v5 = vld [vmem:[%s1155_s1 + $0x20] sm:$0xff]  ;;  %v353_v6 = vld [vmem:[%s1155_s1 + $0x18] sm:$0xff]  ;;  %v352_v7 = vld [vmem:[%s1155_s1 + $0x10] sm:$0xff] }
  0x25   : > { %763 = vmatpush.msra.mxu1 %v357_v2  ;;  %v351_v8 = vld [vmem:[%s1155_s1 + $0x8] sm:$0xff]  ;;  %v350_v9 = vld [vmem:[%s1155_s1] sm:$0xff]  ;;  %v345_v12 = vld [vmem:[%s1000_s19 + $0x18] sm:$0xff]  ;;  %vm506_vm3 = vcmp.lt.s32.totalorder %v504_v44, 256 }
  0x26   : > { %766 = vmatpush.msra.mxu3 %v356_v3  ;;  %392 = vmatpush.msra.mxu0 %v356_v3  ;;  %v347_v10 = vld [vmem:[%s1000_s19 + $0x28] sm:$0xff]  ;;  %v342_v11 = vld [vmem:[%s1000_s19] sm:$0xff]  ;;  %v348_v13 = vld [vmem:[%s1000_s19 + $0x30] sm:$0xff] }
  0x27   : > { %765 = vmatpush.msra.mxu1 %v356_v3  ;;  %v343_v14 = vld [vmem:[%s1000_s19 + $0x8] sm:$0xff]  ;;  %v346_v15 = vld [vmem:[%s1000_s19 + $0x20] sm:$0xff]  ;;  %v349_v16 = vld [vmem:[%s1000_s19 + $0x38] sm:$0xff] }
  0x28   : > { %768 = vmatpush.msra.mxu3 %v355_v4  ;;  %393 = vmatpush.msra.mxu0 %v355_v4  ;;  %v344_v17 = vld [vmem:[%s1000_s19 + $0x10] sm:$0xff]  ;;  %v869_v18 = vld [vmem:[%s1156_s2] ss:$0 sm:$0xff] }
  0x29   : > { %767 = vmatpush.msra.mxu1 %v355_v4  ;;  %v453_v48 = vld [vmem:[#allocation3] sm:$0x3] }
  0x2a   : > { %770 = vmatpush.msra.mxu3 %v354_v5  ;;  %394 = vmatpush.msra.mxu0 %v354_v5 }
  0x2b   : > { %769 = vmatpush.msra.mxu1 %v354_v5 }
  0x2c   : > { %772 = vmatpush.msra.mxu3 %v353_v6  ;;  %395 = vmatpush.msra.mxu0 %v353_v6 }
  0x2d   : > { %771 = vmatpush.msra.mxu1 %v353_v6 }
  0x2e   : > { %774 = vmatpush.msra.mxu3 %v352_v7  ;;  %396 = vmatpush.msra.mxu0 %v352_v7 }
  0x2f   : > { %773 = vmatpush.msra.mxu1 %v352_v7 }
  0x30   : > { %776 = vmatpush.msra.mxu3 %v351_v8  ;;  %397 = vmatpush.msra.mxu0 %v351_v8 }
  0x31   : > { %775 = vmatpush.msra.mxu1 %v351_v8 }
  0x32   : > { %778 = vmatpush.msra.mxu3 %v350_v9  ;;  %398 = vmatpush.msra.mxu0 %v350_v9 }
  0x33   : > { %755 = vmatmul.msk.f32.vlgmr.msra.gmra.mxu3 %vm358_vm1, %v347_v10  ;;  %750 = vmatmul.msk.f32.vlgmr.msra.gmra.mxu0 %vm358_vm1, %v342_v11 }
  0x34   : > { %777 = vmatpush.msra.mxu1 %v350_v9 }
  0x35   : > { %753 = vmatmul.msk.f32.vlgmr.msra.gmra.mxu1 %vm358_vm1, %v345_v12 }
  0x3b   : > { %756 = vmatmul.msk.f32.gmra.mxu3 %vm358_vm1, %v348_v13  ;;  %751 = vmatmul.msk.f32.gmra.mxu0 %vm358_vm1, %v343_v14 }
  0x3d   : > { %754 = vmatmul.msk.f32.gmra.mxu1 %vm358_vm1, %v346_v15 }
  0x43   : > { %757 = vmatmul.msk.f32.gmra.mxu3 %vm358_vm1, %v349_v16  ;;  %752 = vmatmul.msk.f32.gmra.mxu0 %vm358_vm1, %v344_v17 }
  0xb0   : > { %v400_v19 = vpop.f32.mrf.mxu0 }
  0xb1   : > { %v428_v20 = vadd.f32 %v869_v18, %v400_v19  ;;  %v445_v42 = vmul.f32 %v400_v19, %v400_v19 }
  0xb2   : > { %v409_v21 = vpop.f32.mrf.mxu1 }
  0xb3   : > { %437 = vst [vmem:[%s436_s14] sm:$0xff] %v428_v20  ;;  %v431_v22 = vadd.f32 %v869_v18, %v409_v21  ;;  %v448_v39 = vmul.f32 %v409_v21, %v409_v21 }
  0xb5   : > { %440 = vst [vmem:[%s436_s14 + $0x18] sm:$0xff] %v431_v22 }
  0xb6   : > { %v415_v23 = vpop.f32.mrf.mxu3 }
  0xb7   : > { %v433_v24 = vadd.f32 %v869_v18, %v415_v23  ;;  %v450_v37 = vmul.f32 %v415_v23, %v415_v23 }
  0xb8   : > { %v403_v25 = vpop.f32.mrf.mxu0 }
  0xb9   : > { %442 = vst [vmem:[%s436_s14 + $0x28] sm:$0xff] %v433_v24  ;;  %v429_v26 = vadd.f32 %v869_v18, %v403_v25  ;;  %v446_v41 = vmul.f32 %v403_v25, %v403_v25 }
  0xba   : > { %v412_v27 = vpop.f32.mrf.mxu1 }
  0xbb   : > { %438 = vst [vmem:[%s436_s14 + $0x8] sm:$0xff] %v429_v26  ;;  %v432_v28 = vadd.f32 %v869_v18, %v412_v27  ;;  %v449_v38 = vmul.f32 %v412_v27, %v412_v27 }
  0xbd   : > { %441 = vst [vmem:[%s436_s14 + $0x20] sm:$0xff] %v432_v28 }
  0xbe   : > { %v418_v29 = vpop.f32.mrf.mxu3 }
  0xbf   : > { %v434_v30 = vadd.f32 %v869_v18, %v418_v29  ;;  %v451_v36 = vmul.f32 %v418_v29, %v418_v29 }
  0xc0   : > { %v406_v31 = vpop.f32.mrf.mxu0 }
  0xc1   : > { %443 = vst [vmem:[%s436_s14 + $0x30] sm:$0xff] %v434_v30  ;;  %v430_v32 = vadd.f32 %v869_v18, %v406_v31  ;;  %v447_v40 = vmul.f32 %v406_v31, %v406_v31 }
  0xc3   : > { %439 = vst [vmem:[%s436_s14 + $0x10] sm:$0xff] %v430_v32 }
  0xc6   : > { %v421_v33 = vpop.f32.mrf.mxu3 }
  0xc7   : > { %v435_v34 = vadd.f32 %v869_v18, %v421_v33  ;;  %465 = vmatpush.msrb.mxu1 %v421_v33  ;;  %v452_v35 = vmul.f32 %v421_v33, %v421_v33 }
  0xc9   : > { %444 = vst [vmem:[%s436_s14 + $0x38] sm:$0xff] %v435_v34  ;;  %466 = vmatpush.msrb.mxu1 %v418_v29  ;;  %485 = vmatpush.msra.mxu2 %v452_v35 }
  0xcb   : > { %467 = vmatpush.msrb.mxu1 %v415_v23  ;;  %486 = vmatpush.msra.mxu2 %v451_v36 }
  0xcd   : > { %468 = vmatpush.msrb.mxu1 %v412_v27  ;;  %487 = vmatpush.msra.mxu2 %v450_v37 }
  0xcf   : > { %469 = vmatpush.msrb.mxu1 %v409_v21  ;;  %488 = vmatpush.msra.mxu2 %v449_v38 }
  0xd1   : > { %470 = vmatpush.msrb.mxu1 %v406_v31  ;;  %489 = vmatpush.msra.mxu2 %v448_v39 }
  0xd3   : > { %471 = vmatpush.msrb.mxu1 %v403_v25  ;;  %490 = vmatpush.msra.mxu2 %v447_v40 }
  0xd5   : > { %472 = vmatpush.msrb.mxu1 %v400_v19  ;;  %491 = vmatpush.msra.mxu2 %v446_v41 }
  0xd6   : > { %758 = vmatmul.msk.f32.vlgmr.msrb.gmra.mxu1 %vm358_vm1, %v914_v43 }
  0xd7   : > { %492 = vmatpush.msra.mxu2 %v445_v42 }
  0xd8   : > { %759 = vmatmul.msk.f32.vlgmr.msra.gmra.mxu2 %vm358_vm1, %v914_v43 }
 0x153   : > { %v474_v46 = vpop.f32.mrf.mxu1 }
 0x15b   : > { %v494_v45 = vpop.f32.mrf.mxu2 }
 0x15c   : > { %v499_v47 = vrot.slane %v494_v45, 7 }
 0x15e   : > { %v501_v49 = vsel %vm500_vm2, %v474_v46, %v499_v47 }
 0x15f   : > { %v503_v50 = vadd.f32 %v501_v49, %v453_v48 }
 0x161   : > { %508 = vst.msk [vmem:[#allocation3] sm:$0x3] %vm506_vm3, %v503_v50 }
 0x162 PF: > { %p760_p11 = scmp.ne.s32.totalorder %s899_s25, 1 }
 0x163   : > { %s539_s22 = scalar_lea.vmem (!%p760_p11), [#allocation2], %s748_s11 }
 0x164   : > { %512 = sbr.rel (%p760_p11) target bundleno = 547 (0x223), region = 60 }
 0x169   : > { %v609_v51 = vld [vmem:[%s1159_s5 + $0x78] sm:$0xff]  ;;  %v608_v52 = vld [vmem:[%s1159_s5 + $0x70] sm:$0xff]  ;;  %v607_v53 = vld [vmem:[%s1159_s5 + $0x68] sm:$0xff]  ;;  %vm655_vm15 = vcmask 80896  }
 0x16a   : > { %780 = vmatpush.msra.mxu2 %v609_v51  ;;  %781 = vmatpush.msra.mxu3 %v609_v51  ;;  %v606_v54 = vld [vmem:[%s1159_s5 + $0x60] sm:$0xff]  ;;  %v605_v56 = vld [vmem:[%s1159_s5 + $0x58] sm:$0xff]  ;;  %v604_v59 = vld [vmem:[%s1159_s5 + $0x50] sm:$0xff] }
 0x16b   : > { %614 = vmatpush.msra.mxu0 %v609_v51  ;;  %779 = vmatpush.msra.mxu1 %v609_v51  ;;  %v513_v55 = vld [vmem:[#allocation3] sm:$0x3]  ;;  %v603_v62 = vld [vmem:[%s1159_s5 + $0x48] sm:$0xff]  ;;  %v601_v2 = vld [vmem:[%s1159_s5 + $0x38] sm:$0xff] }
 0x16c   : > { %783 = vmatpush.msra.mxu2 %v608_v52  ;;  %784 = vmatpush.msra.mxu3 %v608_v52  ;;  %v1071_v57 = vmul.f32 0.00390625, %v513_v55  ;;  %v516_v58 = vrot.slane %v513_v55, 1  ;;  %v602_v0 = vld [vmem:[%s1159_s5 + $0x40] sm:$0xff]  ;;  %v600_v3 = vld [vmem:[%s1159_s5 + $0x30] sm:$0xff]  ;;  %v599_v4 = vld [vmem:[%s1159_s5 + $0x28] sm:$0xff] }
 0x16d   : > { %615 = vmatpush.msra.mxu0 %v608_v52  ;;  %782 = vmatpush.msra.mxu1 %v608_v52  ;;  %v598_v6 = vld [vmem:[%s1159_s5 + $0x20] sm:$0xff]  ;;  %v597_v8 = vld [vmem:[%s1159_s5 + $0x18] sm:$0xff]  ;;  %v596_v10 = vld [vmem:[%s1159_s5 + $0x10] sm:$0xff] }
 0x16e   : > { %786 = vmatpush.msra.mxu2 %v607_v53  ;;  %787 = vmatpush.msra.mxu3 %v607_v53  ;;  %v518_v60 = vmul.f32 0.00390625, %v516_v58  ;;  %v519_v61 = vmul.f32 %v1071_v57, %v1071_v57  ;;  %v595_v12 = vld [vmem:[%s1159_s5 + $0x8] sm:$0xff]  ;;  %v535_v14 = vld [vmem:[%s1156_s2] sm:$0x1]  ;;  %v546_v23 = vld [vmem:[%s539_s22 + $0x30] sm:$0xff] }
 0x16f   : > { %616 = vmatpush.msra.mxu0 %v607_v53  ;;  %785 = vmatpush.msra.mxu1 %v607_v53  ;;  %v594_v15 = vld [vmem:[%s1159_s5] sm:$0xff]  ;;  %v536_v18 = vadd.f32 %v535_v14, %v1071_v57  ;;  %v542_v25 = vld [vmem:[%s539_s22 + $0x10] sm:$0xff]  ;;  %v545_v28 = vld [vmem:[%s539_s22 + $0x28] sm:$0xff] }
 0x170   : > { %789 = vmatpush.msra.mxu2 %v606_v54  ;;  %790 = vmatpush.msra.mxu3 %v606_v54  ;;  %v520_v63 = vsub.f32 %v518_v60, %v519_v61  ;;  %v532_v17 = vld [vmem:[%s1157_s3] sm:$0x1]  ;;  %v547_v29 = vld [vmem:[%s539_s22 + $0x38] sm:$0xff]  ;;  %v541_v30 = vld [vmem:[%s539_s22 + $0x8] sm:$0xff] }
 0x171   : > { %617 = vmatpush.msra.mxu0 %v606_v54  ;;  %788 = vmatpush.msra.mxu1 %v606_v54  ;;  %v534_v21 = vld [vmem:[%s1158_s4] sm:$0x1]  ;;  %v543_v31 = vld [vmem:[%s539_s22 + $0x18] sm:$0xff] }
 0x172   : > { %792 = vmatpush.msra.mxu2 %v605_v56  ;;  %793 = vmatpush.msra.mxu3 %v605_v56  ;;  %v521_v1 = vadd.f32 1e-05, %v520_v63  ;;  %v544_v22 = vld [vmem:[%s539_s22 + $0x20] sm:$0xff] }
 0x173   : > { %618 = vmatpush.msra.mxu0 %v605_v56  ;;  %791 = vmatpush.msra.mxu1 %v605_v56  ;;  %v540_v24 = vld [vmem:[%s539_s22] sm:$0xff] }
 0x174   : > { %795 = vmatpush.msra.mxu2 %v604_v59  ;;  %796 = vmatpush.msra.mxu3 %v604_v59  ;;  %871 = vrsqrt.f32 %v521_v1  ;;  %vm528_vm4 = vweird.f32 %v521_v1 }
 0x175   : > { %619 = vmatpush.msra.mxu0 %v604_v59  ;;  %794 = vmatpush.msra.mxu1 %v604_v59 }
 0x176   : > { %798 = vmatpush.msra.mxu2 %v603_v62  ;;  %799 = vmatpush.msra.mxu3 %v603_v62 }
 0x177   : > { %620 = vmatpush.msra.mxu0 %v603_v62  ;;  %797 = vmatpush.msra.mxu1 %v603_v62 }
 0x178   : > { %801 = vmatpush.msra.mxu2 %v602_v0  ;;  %802 = vmatpush.msra.mxu3 %v602_v0 }
 0x179   : > { %621 = vmatpush.msra.mxu0 %v602_v0  ;;  %800 = vmatpush.msra.mxu1 %v602_v0 }
 0x17a   : > { %804 = vmatpush.msra.mxu2 %v601_v2  ;;  %805 = vmatpush.msra.mxu3 %v601_v2  ;;  %v872_v5 = vpop.eup %871 }
 0x17b   : > { %622 = vmatpush.msra.mxu0 %v601_v2  ;;  %803 = vmatpush.msra.mxu1 %v601_v2  ;;  %v523_v7 = vmul.f32 %v872_v5, %v521_v1  ;;  %vm529_vm5 = vweird.f32 %v872_v5  ;;  %v870_v2 = vld [vmem:[%s1160_s6] ss:$0 sm:$0xff] }
 0x17c   : > { %807 = vmatpush.msra.mxu2 %v600_v3  ;;  %808 = vmatpush.msra.mxu3 %v600_v3  ;;  %vm530_vm6 = vmor %vm528_vm4, %vm529_vm5 }
 0x17d   : > { %623 = vmatpush.msra.mxu0 %v600_v3  ;;  %806 = vmatpush.msra.mxu1 %v600_v3  ;;  %v524_v9 = vmul.f32 %v872_v5, %v523_v7 }
 0x17e   : > { %810 = vmatpush.msra.mxu2 %v599_v4  ;;  %811 = vmatpush.msra.mxu3 %v599_v4 }
 0x17f   : > { %624 = vmatpush.msra.mxu0 %v599_v4  ;;  %809 = vmatpush.msra.mxu1 %v599_v4  ;;  %v525_v11 = vmul.f32 0.5, %v524_v9 }
 0x180   : > { %813 = vmatpush.msra.mxu2 %v598_v6  ;;  %814 = vmatpush.msra.mxu3 %v598_v6 }
 0x181   : > { %625 = vmatpush.msra.mxu0 %v598_v6  ;;  %812 = vmatpush.msra.mxu1 %v598_v6  ;;  %v526_v13 = vsub.f32 1.5, %v525_v11 }
 0x182   : > { %816 = vmatpush.msra.mxu2 %v597_v8  ;;  %817 = vmatpush.msra.mxu3 %v597_v8 }
 0x183   : > { %626 = vmatpush.msra.mxu0 %v597_v8  ;;  %815 = vmatpush.msra.mxu1 %v597_v8  ;;  %v527_v16 = vmul.f32 %v872_v5, %v526_v13 }
 0x184   : > { %819 = vmatpush.msra.mxu2 %v596_v10  ;;  %820 = vmatpush.msra.mxu3 %v596_v10 }
 0x185   : > { %627 = vmatpush.msra.mxu0 %v596_v10  ;;  %818 = vmatpush.msra.mxu1 %v596_v10  ;;  %v531_v19 = vsel %vm530_vm6, %v872_v5, %v527_v16 }
 0x186   : > { %822 = vmatpush.msra.mxu2 %v595_v12  ;;  %823 = vmatpush.msra.mxu3 %v595_v12  ;;  %v533_v20 = vmul.f32 %v532_v17, %v531_v19 }
 0x187   : > { %628 = vmatpush.msra.mxu0 %v595_v12  ;;  %821 = vmatpush.msra.mxu1 %v595_v12 }
 0x188   : > { %825 = vmatpush.msra.mxu2 %v594_v15  ;;  %826 = vmatpush.msra.mxu3 %v594_v15  ;;  %v537_v26 = vmul.f32 %v536_v18, %v533_v20  ;;  %v549_v27 = vperm.slane %v533_v20, 0 }
 0x189   : > { %629 = vmatpush.msra.mxu0 %v594_v15  ;;  %824 = vmatpush.msra.mxu1 %v594_v15 }
 0x18a   : > { %v538_v32 = vsub.f32 %v534_v21, %v537_v26  ;;  %v555_v33 = vmul.f32 %v549_v27, %v544_v22  ;;  %v557_v34 = vmul.f32 %v549_v27, %v546_v23  ;;  %v551_v35 = vmul.f32 %v549_v27, %v540_v24 }
 0x18b   : > { %v553_v36 = vmul.f32 %v549_v27, %v542_v25  ;;  %v556_v37 = vmul.f32 %v549_v27, %v545_v28  ;;  %v558_v38 = vmul.f32 %v549_v27, %v547_v29  ;;  %v552_v39 = vmul.f32 %v549_v27, %v541_v30 }
 0x18c   : > { %v560_v40 = vperm.slane %v538_v32, 0  ;;  %v554_v41 = vmul.f32 %v549_v27, %v543_v31 }
 0x18e   : > { %v566_v42 = vadd.f32 %v560_v40, %v555_v33  ;;  %v568_v43 = vadd.f32 %v560_v40, %v557_v34  ;;  %v562_v44 = vadd.f32 %v560_v40, %v551_v35  ;;  %v564_v45 = vadd.f32 %v560_v40, %v553_v36 }
 0x18f   : > { %v567_v46 = vadd.f32 %v560_v40, %v556_v37  ;;  %v569_v47 = vadd.f32 %v560_v40, %v558_v38  ;;  %v563_v48 = vadd.f32 %v560_v40, %v552_v39  ;;  %v565_v49 = vadd.f32 %v560_v40, %v554_v41 }
 0x190   : > { %vm574_vm7 = vcmp.gt.f32.partialorder %v566_v42, 0.0  ;;  %v582_v50 = vmul.f32 0.01, %v566_v42  ;;  %vm576_vm8 = vcmp.gt.f32.partialorder %v568_v43, 0.0  ;;  %v584_v51 = vmul.f32 0.01, %v568_v43 }
 0x191   : > { %vm570_vm9 = vcmp.gt.f32.partialorder %v562_v44, 0.0  ;;  %v578_v52 = vmul.f32 0.01, %v562_v44  ;;  %vm572_vm10 = vcmp.gt.f32.partialorder %v564_v45, 0.0  ;;  %v580_v53 = vmul.f32 0.01, %v564_v45 }
 0x192   : > { %v590_v54 = vsel %vm574_vm7, %v566_v42, %v582_v50  ;;  %v592_v55 = vsel %vm576_vm8, %v568_v43, %v584_v51  ;;  %v583_v58 = vmul.f32 0.01, %v567_v46  ;;  %v585_v59 = vmul.f32 0.01, %v569_v47 }
 0x193   : > { %642 = vmatmul.f32.vlgmr.msra.gmra.mxu2 %v590_v54  ;;  %648 = vmatmul.f32.vlgmr.msra.gmra.mxu3 %v592_v55  ;;  %v586_v56 = vsel %vm570_vm9, %v562_v44, %v578_v52  ;;  %v588_v57 = vsel %vm572_vm10, %v564_v45, %v580_v53  ;;  %vm575_vm11 = vcmp.gt.f32.partialorder %v567_v46, 0.0  ;;  %vm577_vm12 = vcmp.gt.f32.partialorder %v569_v47, 0.0 }
 0x194   : > { %630 = vmatmul.f32.vlgmr.msra.gmra.mxu0 %v586_v56  ;;  %636 = vmatmul.f32.vlgmr.msra.gmra.mxu1 %v588_v57  ;;  %v579_v60 = vmul.f32 0.01, %v563_v48  ;;  %v581_v61 = vmul.f32 0.01, %v565_v49  ;;  %vm571_vm13 = vcmp.gt.f32.partialorder %v563_v48, 0.0  ;;  %vm573_vm14 = vcmp.gt.f32.partialorder %v565_v49, 0.0 }
 0x195   : > { %v591_v62 = vsel %vm575_vm11, %v567_v46, %v583_v58  ;;  %v593_v63 = vsel %vm577_vm12, %v569_v47, %v585_v59 }
 0x196   : > { %v587_v0 = vsel %vm571_vm13, %v563_v48, %v579_v60  ;;  %v589_v1 = vsel %vm573_vm14, %v565_v49, %v581_v61 }
 0x19b   : > { %645 = vmatmul.f32.gmra.mxu2 %v591_v62  ;;  %651 = vmatmul.f32.gmra.mxu3 %v593_v63 }
 0x19c   : > { %633 = vmatmul.f32.gmra.mxu0 %v587_v0  ;;  %639 = vmatmul.f32.gmra.mxu1 %v589_v1 }
 0x211   : > { %v631_v3 = vpop.f32.mrf.mxu0  ;;  %v637_v4 = vpop.f32.mrf.mxu1 }
 0x212   : > { %v632_v5 = vadd.f32 %v870_v2, %v631_v3  ;;  %v638_v6 = vadd.f32 %v870_v2, %v637_v4 }
 0x214   : > { %656 = vst.msk [vmem:[%s1005_s23] sm:$0xff] %vm655_vm15, %v632_v5 }
 0x215   : > { %658 = vst.msk [vmem:[%s1005_s23 + $0x10] sm:$0xff] %vm655_vm15, %v638_v6 }
 0x216   : > { %v643_v7 = vpop.f32.mrf.mxu2  ;;  %v649_v8 = vpop.f32.mrf.mxu3 }
 0x217   : > { %v644_v9 = vadd.f32 %v870_v2, %v643_v7  ;;  %v650_v10 = vadd.f32 %v870_v2, %v649_v8 }
 0x219   : > { %660 = vst.msk [vmem:[%s1005_s23 + $0x20] sm:$0xff] %vm655_vm15, %v644_v9  ;;  %v634_v11 = vpop.f32.mrf.mxu0  ;;  %v640_v12 = vpop.f32.mrf.mxu1 }
 0x21a   : > { %662 = vst.msk [vmem:[%s1005_s23 + $0x30] sm:$0xff] %vm655_vm15, %v650_v10  ;;  %v635_v13 = vadd.f32 %v870_v2, %v634_v11  ;;  %v641_v14 = vadd.f32 %v870_v2, %v640_v12 }
 0x21c   : > { %657 = vst.msk [vmem:[%s1005_s23 + $0x8] sm:$0xff] %vm655_vm15, %v635_v13 }
 0x21d   : > { %659 = vst.msk [vmem:[%s1005_s23 + $0x18] sm:$0xff] %vm655_vm15, %v641_v14 }
 0x21e   : > { %v646_v15 = vpop.f32.mrf.mxu2  ;;  %v652_v16 = vpop.f32.mrf.mxu3 }
 0x21f   : > { %v647_v17 = vadd.f32 %v870_v2, %v646_v15  ;;  %v653_v18 = vadd.f32 %v870_v2, %v652_v16 }
 0x221   : > { %661 = vst.msk [vmem:[%s1005_s23 + $0x28] sm:$0xff] %vm655_vm15, %v647_v17 }
 0x222   : > { %663 = vst.msk [vmem:[%s1005_s23 + $0x38] sm:$0xff] %vm655_vm15, %v653_v18 }
 0x223 PF: > { %s17_s28 = sadd.s32 1, %s911_s28   ;;  %s1162_s24 = smov %s903_s26 }
 0x224   : > { %p14_p12 = scmp.ge.s32.totalorder %s17_s28, 10   ;;  %s1163_s25 = smov %s907_s27 }
 0x225   : > { %s1164_s26 = smov %s1167_s29  ;;  %s1165_s27 = smov %s1171_s30 }
 0x226   :  { %16 = sbr.rel (!%p14_p12) target bundleno = 3 (0x3), region = 92 }

</bundles_post_ra>
